<compile_context>
chip_gen: v5e
topology: v5e:2x2
jax: 0.10.0
libtpu: 0.0.40
codegen_flags: <defaults>
</compile_context>

<pallas_src>
import functools

import jax
import jax.numpy as jnp
from jax.experimental import pallas as pl
from jax.experimental.pallas import tpu as pltpu

LEAKY_SLOPE = 0.4


def _round_up(x, n):
    return ((x + n - 1) // n) * n


def _tconv_phase_kernel(w_ref, b_ref, x_ref, o_ref, *, leaky_slope):
    # w_ref: (R, Kc)     R = stride*Cout, Kc = m*Cin   (whole weight, resident)
    # b_ref: (R, 1)      per-row bias (bias[co] repeated per phase)
    # x_ref: (Kc, TL)    lane tile of the stacked shifted input (lanes = batch*time)
    # o_ref: (R, TL)     lane-dense output tile (phase-major rows)
    y = jnp.dot(w_ref[...], x_ref[...], preferred_element_type=jnp.float32)
    y = y + b_ref[...]
    if leaky_slope is not None:
        y = jnp.where(y >= 0, y, leaky_slope * y)
    o_ref[...] = y.astype(o_ref.dtype)


def tconv1d_pallas(x, w, b, *, stride, padding, leaky_slope=None,
                   lane_tile=512, compute_dtype=None):
    """ConvTranspose1d(Cin, Cout, K, stride, padding) (+ optional fused LeakyReLU).

    x: (B, Cin, T) float32, w: (Cin, Cout, K) PyTorch layout, b: (Cout,).
    Returns (B, Cout, (T-1)*stride + K - 2*padding)."""
    assert padding >= 0, "negative ConvTranspose1d padding is not supported"
    out_dtype = x.dtype
    B, Cin, T = x.shape
    Cin_w, Cout, K = w.shape
    assert Cin == Cin_w

    m = -(-K // stride)            # taps per phase
    Kpad = m * stride
    Tq = T + m - 1                 # output positions per phase (full, pre-crop)
    T_out = (T - 1) * stride + K - 2 * padding

    # --- weight / bias prep (tiny) ---
    # W_mat[r*Cout + co, j*Cin + ci] = w[ci, co, r + j*stride]  (zero for k >= K)
    w_p = jnp.pad(w, ((0, 0), (0, 0), (0, Kpad - K))).reshape(Cin, Cout, m, stride)
    w_mat = w_p.transpose(3, 1, 2, 0).reshape(stride * Cout, m * Cin)
    b_mat = jnp.tile(b[None, :], (stride, 1)).reshape(stride * Cout, 1).astype(jnp.float32)

    # --- stacked shifted input (shared by all phases):
    #     X[j*Cin + ci, b*Tq + q] = x[b, ci, q - j]  (zero outside [0, T)) ---
    shifted = [jnp.pad(x, ((0, 0), (0, 0), (j, m - 1 - j))) for j in range(m)]
    xs = jnp.concatenate(shifted, axis=1)                      # (B, m*Cin, Tq)
    xs = xs.transpose(1, 0, 2).reshape(m * Cin, B * Tq)        # lanes = batch*time

    if compute_dtype is not None:
        w_mat = w_mat.astype(compute_dtype)
        xs = xs.astype(compute_dtype)

    # --- lane padding / tiling ---
    L = B * Tq
    if L <= lane_tile:
        lane_pad = _round_up(L, 128)
        tile = lane_pad
    else:
        lane_pad = _round_up(L, lane_tile)
        tile = lane_tile
    xs = jnp.pad(xs, ((0, 0), (0, lane_pad - L)))

    R, Kc = w_mat.shape
    grid = (lane_pad // tile,)

    cost = pl.CostEstimate(
        flops=2 * R * Kc * lane_pad,
        transcendentals=0,
        bytes_accessed=4 * (R * Kc + R + Kc * lane_pad + R * lane_pad),
    )

    y = pl.pallas_call(
        functools.partial(_tconv_phase_kernel, leaky_slope=leaky_slope),
        out_shape=jax.ShapeDtypeStruct((R, lane_pad), out_dtype),
        grid=grid,
        in_specs=[
            pl.BlockSpec((R, Kc), lambda t: (0, 0)),   # whole weight, resident
            pl.BlockSpec((R, 1), lambda t: (0, 0)),    # bias
            pl.BlockSpec((Kc, tile), lambda t: (0, t)),
        ],
        out_specs=pl.BlockSpec((R, tile), lambda t: (0, t)),
        compiler_params=pltpu.CompilerParams(dimension_semantics=("parallel",)),
        cost_estimate=cost,
    )(w_mat, b_mat, xs)

    # --- interleave phases back into the time axis, crop transposed-conv padding ---
    y = y[:, :L].reshape(stride, Cout, B, Tq)          # [r, co, b, q]
    y = y.transpose(2, 1, 3, 0).reshape(B, Cout, Tq * stride)
    return y[:, :, padding:padding + T_out]


@functools.partial(jax.jit, static_argnames=("kernel_size", "scales"))
def transposed_upsample_net_forward(x, params, *, kernel_size, scales):
    """Forward pass of TransposedUpsampleNet (default config:
    residual=False, rezero=False, weightnorm=False, use_last_layer_act_func=False).

    x: (B, in_channels, T)  ->  (B, out_channels, prod(scales)*T)
    params: tuple of (weight (Cin, Cout, K), bias (Cout,)) per layer.
    """
    # TODO(synk): residual / residual_linear / rezero / weightnorm branches
    # (all disabled in the module's default configuration) are not implemented.
    h = x
    n_layers = len(scales)
    for i, scale in enumerate(scales):
        w, b = params[i]
        k = kernel_size[i] if isinstance(kernel_size, (list, tuple)) else kernel_size
        pad = (k - scale) // 2
        is_last = (i + 1 == n_layers)
        h = tconv1d_pallas(
            h, w, b, stride=scale, padding=pad,
            leaky_slope=None if is_last else LEAKY_SLOPE,
        )
    return h


def _reference(x, params, *, kernel_size, scales):
    """Pure-JAX reference matching PyTorch's ConvTranspose1d + LeakyReLU(0.4) stack."""
    h = x
    for i, scale in enumerate(scales):
        w, b = params[i]
        k = kernel_size[i] if isinstance(kernel_size, (list, tuple)) else kernel_size
        pad = (k - scale) // 2
        K = w.shape[2]
        w_f = jnp.flip(w, axis=2).transpose(1, 0, 2)   # (Cout, Cin, K), flipped
        h = jax.lax.conv_general_dilated(
            h, w_f, window_strides=(1,),
            padding=[(K - 1 - pad, K - 1 - pad)],
            lhs_dilation=(scale,),
            dimension_numbers=("NCH", "OIH", "NCH"),
        ) + b[None, :, None]
        if i + 1 < len(scales):
            h = jnp.where(h >= 0, h, LEAKY_SLOPE * h)
    return h


if __name__ == "__main__":
    # Small config consistent with the module: HiFiGAN-style kernel = 2*scale,
    # padding = (kernel - scale)//2 = scale//2 (the default kernel_size=3 with
    # scales=[16,16] would give negative padding, which PyTorch rejects).
    in_channels, out_channels, hidden_channels = 4, 4, 8
    scales = (4, 4)
    kernel_size = 8
    B, T = 2, 16

    key = jax.random.PRNGKey(0)
    keys = jax.random.split(key, 1 + len(scales))
    x = jax.random.normal(keys[0], (B, in_channels, T), jnp.float32)

    params = []
    cin = in_channels
    for i, scale in enumerate(scales):
        cout = out_channels if i + 1 == len(scales) else hidden_channels
        kw, kb = jax.random.split(keys[i + 1])
        # PyTorch ConvTranspose1d weight layout: (Cin, Cout, K)
        w = 0.1 * jax.random.normal(kw, (cin, cout, kernel_size), jnp.float32)
        bb = 0.1 * jax.random.normal(kb, (cout,), jnp.float32)
        params.append((w, bb))
        cin = cout
    params = tuple(params)

    out = transposed_upsample_net_forward(x, params, kernel_size=kernel_size, scales=scales)
    out = jax.block_until_ready(out)

    ref = _reference(x, params, kernel_size=kernel_size, scales=scales)
    expected_shape = (B, out_channels, T * scales[0] * scales[1])
    assert out.shape == ref.shape == expected_shape, (out.shape, ref.shape, expected_shape)
    err = float(jnp.max(jnp.abs(out - ref)))
    assert err < 1e-4, err

    print("KERNEL_OK")
</pallas_src>

<mosaic_0001>
module attributes {stable_mosaic.version = 11 : i64} {
  func.func @_tconv_phase_kernel(%arg0: i32, %arg1: memref<32x8xf32, #tpu.memory_space<vmem>>, %arg2: memref<32x1xf32, #tpu.memory_space<vmem>>, %arg3: memref<8x128xf32, #tpu.memory_space<vmem>>, %arg4: memref<32x128xf32, #tpu.memory_space<vmem>>) attributes {dimension_semantics = [#tpu.dimension_semantics<parallel>], iteration_bounds = array<i64: 1>, scalar_prefetch = 0 : i64, scratch_operands = 0 : i64, tpu.core_type = #tpu.core_type<tc>, window_params = [{pipeline_mode = #tpu.pipeline_mode<synchronous>, transform_indices = @transform_0, window_bounds = array<i64: 32, 8>}, {pipeline_mode = #tpu.pipeline_mode<synchronous>, transform_indices = @transform_1, window_bounds = array<i64: 32, 1>}, {transform_indices = @transform_2, window_bounds = array<i64: 8, 128>}, {transform_indices = @transform_3, window_bounds = array<i64: 32, 128>}]} {
    %c0 = arith.constant 0 : index
    %c0_0 = arith.constant 0 : index
    %0 = vector.load %arg1[%c0, %c0_0] : memref<32x8xf32, #tpu.memory_space<vmem>>, vector<32x8xf32>
    %c0_1 = arith.constant 0 : index
    %c0_2 = arith.constant 0 : index
    %1 = vector.load %arg3[%c0_1, %c0_2] : memref<8x128xf32, #tpu.memory_space<vmem>>, vector<8x128xf32>
    %cst = arith.constant dense<0.000000e+00> : vector<32x128xf32>
    %2 = tpu.matmul %0, %1, %cst {dimension_numbers = #tpu.dot_dimension_numbers<[1], [0], [0], [1], [0, 0, 1, 1], [], []>} : vector<32x8xf32>, vector<8x128xf32>, vector<32x128xf32> -> vector<32x128xf32>
    %c0_3 = arith.constant 0 : index
    %c0_4 = arith.constant 0 : index
    %3 = vector.load %arg2[%c0_3, %c0_4] : memref<32x1xf32, #tpu.memory_space<vmem>>, vector<32x1xf32>
    %4 = vector.broadcast %3 : vector<32x1xf32> to vector<32x128xf32>
    %5 = arith.addf %2, %4 : vector<32x128xf32>
    %cst_5 = arith.constant 0.000000e+00 : f32
    %6 = vector.broadcast %cst_5 : f32 to vector<32x128xf32>
    %7 = arith.cmpf oge, %5, %6 : vector<32x128xf32>
    %cst_6 = arith.constant 4.000000e-01 : f32
    %8 = vector.broadcast %cst_6 : f32 to vector<32x128xf32>
    %9 = arith.mulf %8, %5 : vector<32x128xf32>
    %10 = arith.select %7, %5, %9 : vector<32x128xi1>, vector<32x128xf32>
    %c0_7 = arith.constant 0 : index
    %c0_8 = arith.constant 0 : index
    %11 = vector.load %arg4[%c0_7, %c0_8] : memref<32x128xf32, #tpu.memory_space<vmem>>, vector<32x128xf32>
    tpu.vector_store %arg4[%c0_7, %c0_8], %10 {strides = array<i32>} : memref<32x128xf32, #tpu.memory_space<vmem>>, vector<32x128xf32>,
    return
  }
  func.func @transform_0(%arg0: i32) -> (i32, i32) {
    %c0_i32 = arith.constant 0 : i32
    %c0_i32_0 = arith.constant 0 : i32
    %c0_i32_1 = arith.constant 0 : i32
    return %c0_i32, %c0_i32_0 : i32, i32
  }
  func.func @transform_1(%arg0: i32) -> (i32, i32) {
    %c0_i32 = arith.constant 0 : i32
    %c0_i32_0 = arith.constant 0 : i32
    %c0_i32_1 = arith.constant 0 : i32
    return %c0_i32, %c0_i32_0 : i32, i32
  }
  func.func @transform_2(%arg0: i32) -> (i32, i32) {
    %c0_i32 = arith.constant 0 : i32
    %c0_i32_0 = arith.constant 0 : i32
    return %c0_i32, %arg0 : i32, i32
  }
  func.func @transform_3(%arg0: i32) -> (i32, i32) {
    %c0_i32 = arith.constant 0 : i32
    %c0_i32_0 = arith.constant 0 : i32
    return %c0_i32, %arg0 : i32, i32
  }
}

module attributes {stable_mosaic.version = 11 : i64} {
  func.func @_tconv_phase_kernel(%arg0: i32, %arg1: memref<16x16xf32, #tpu.memory_space<vmem>>, %arg2: memref<16x1xf32, #tpu.memory_space<vmem>>, %arg3: memref<16x256xf32, #tpu.memory_space<vmem>>, %arg4: memref<16x256xf32, #tpu.memory_space<vmem>>) attributes {dimension_semantics = [#tpu.dimension_semantics<parallel>], iteration_bounds = array<i64: 1>, scalar_prefetch = 0 : i64, scratch_operands = 0 : i64, tpu.core_type = #tpu.core_type<tc>, window_params = [{pipeline_mode = #tpu.pipeline_mode<synchronous>, transform_indices = @transform_0, window_bounds = array<i64: 16, 16>}, {pipeline_mode = #tpu.pipeline_mode<synchronous>, transform_indices = @transform_1, window_bounds = array<i64: 16, 1>}, {transform_indices = @transform_2, window_bounds = array<i64: 16, 256>}, {transform_indices = @transform_3, window_bounds = array<i64: 16, 256>}]} {
    %c0 = arith.constant 0 : index
    %c0_0 = arith.constant 0 : index
    %0 = vector.load %arg1[%c0, %c0_0] : memref<16x16xf32, #tpu.memory_space<vmem>>, vector<16x16xf32>
    %c0_1 = arith.constant 0 : index
    %c0_2 = arith.constant 0 : index
    %1 = vector.load %arg3[%c0_1, %c0_2] : memref<16x256xf32, #tpu.memory_space<vmem>>, vector<16x256xf32>
    %cst = arith.constant dense<0.000000e+00> : vector<16x256xf32>
    %2 = tpu.matmul %0, %1, %cst {dimension_numbers = #tpu.dot_dimension_numbers<[1], [0], [0], [1], [0, 0, 1, 1], [], []>} : vector<16x16xf32>, vector<16x256xf32>, vector<16x256xf32> -> vector<16x256xf32>
    %c0_3 = arith.constant 0 : index
    %c0_4 = arith.constant 0 : index
    %3 = vector.load %arg2[%c0_3, %c0_4] : memref<16x1xf32, #tpu.memory_space<vmem>>, vector<16x1xf32>
    %4 = vector.broadcast %3 : vector<16x1xf32> to vector<16x256xf32>
    %5 = arith.addf %2, %4 : vector<16x256xf32>
    %c0_5 = arith.constant 0 : index
    %c0_6 = arith.constant 0 : index
    %6 = vector.load %arg4[%c0_5, %c0_6] : memref<16x256xf32, #tpu.memory_space<vmem>>, vector<16x256xf32>
    tpu.vector_store %arg4[%c0_5, %c0_6], %5 {strides = array<i32>} : memref<16x256xf32, #tpu.memory_space<vmem>>, vector<16x256xf32>,
    return
  }
  func.func @transform_0(%arg0: i32) -> (i32, i32) {
    %c0_i32 = arith.constant 0 : i32
    %c0_i32_0 = arith.constant 0 : i32
    %c0_i32_1 = arith.constant 0 : i32
    return %c0_i32, %c0_i32_0 : i32, i32
  }
  func.func @transform_1(%arg0: i32) -> (i32, i32) {
    %c0_i32 = arith.constant 0 : i32
    %c0_i32_0 = arith.constant 0 : i32
    %c0_i32_1 = arith.constant 0 : i32
    return %c0_i32, %c0_i32_0 : i32, i32
  }
  func.func @transform_2(%arg0: i32) -> (i32, i32) {
    %c0_i32 = arith.constant 0 : i32
    %c0_i32_0 = arith.constant 0 : i32
    return %c0_i32, %arg0 : i32, i32
  }
  func.func @transform_3(%arg0: i32) -> (i32, i32) {
    %c0_i32 = arith.constant 0 : i32
    %c0_i32_0 = arith.constant 0 : i32
    return %c0_i32, %arg0 : i32, i32
  }
}

</mosaic_0001>

<bundles_post_ra>
// kernel: tile.10
= control target key start
LH: loop header
LB: loop body
LE: loop exit
PB: predicated region body
PF: predicated region fallthrough
CT: control target
= control target key end

     0   :  { %s22_s0 = inlined_call_operand.vmem [shape: f32[8], index: 0, kind: input, shape index: {}]   ;;  %s23_s1 = inlined_call_operand.vmem [shape: f32[4,1,1,8], index: 1, kind: output, shape index: {}]  }
   0x1   :  { %v4_v0 = vld [vmem:[%s22_s0] ss:$0 sm:$0xff] }
   0x2   :  { %5 = vst [vmem:[%s23_s1] sm:$0xf] %v4_v0 }

// kernel: tile.14
= control target key start
LH: loop header
LB: loop body
LE: loop exit
PB: predicated region body
PF: predicated region fallthrough
CT: control target
= control target key end

     0   :  { %s22_s0 = inlined_call_operand.vmem [shape: f32[4], index: 0, kind: input, shape index: {}]   ;;  %s23_s1 = inlined_call_operand.vmem [shape: f32[4,1,1,4], index: 1, kind: output, shape index: {}]  }
   0x1   :  { %v4_v0 = vld [vmem:[%s22_s0] ss:$0 sm:$0xff] }
   0x2   :  { %5 = vst [vmem:[%s23_s1] sm:$0xf] %v4_v0 }

// kernel: tile.0
= control target key start
LH: loop header
LB: loop body
LE: loop exit
PB: predicated region body
PF: predicated region fallthrough
CT: control target
= control target key end

     0   :  { %s34_s8 = smov 125   ;;  %s35_s9 = smov 126   ;;  %vm7_vm0 = vcmask 7168   ;;  %s61_s0 = inlined_call_operand.vmem [shape: f32[4,1,1,4], index: 0, kind: input, shape index: {}]   ;;  %s62_s1 = inlined_call_operand.vmem [shape: f32[16,1], index: 1, kind: output, shape index: {}]  }
   0x1   :  { %v4_v0 = vld [vmem:[%s61_s0] sm:$0xf]  ;;  %s33_s0 = smov 127  }
   0x2   :  { %5 = vst [vmem:[#allocation0] sm:$0xf] %v4_v0 }
   0x9   :  { %v9_v1 = vld [vmem:[#allocation0] sm:$0xf]  }
   0xa   :  { %v21_v2 = vld [vmem:[#allocation0] sm:$0xf]   ;;  %10 = vrot.lane.b32.xlu0 %v9_v1, %s33_s0 }
   0xb   :  { %22 = vrot.lane.b32.xlu1 %v21_v2, %s34_s8  ;;  %v15_v3 = vld [vmem:[#allocation0] sm:$0xf]  }
   0xc   :  { %v6_v4 = vld [vmem:[#allocation0] sm:$0xf]  }
   0xd   :  { %8 = vst.msk [vmem:[%s62_s1] ss:$4 sm:$0xf] %vm7_vm0, %v6_v4  }
  0x12   :  { %16 = vrot.lane.b32.xlu0 %v15_v3, %s35_s9 }
  0x7c   :  { %v11_v5 = vpop.permute.xlu0 %10  }
  0x7d   :  { %v23_v6 = vpop.permute.xlu1 %22   ;;  %27 = vst.msk [vmem:[%s62_s1 + $0x1] ss:$4 sm:$0xf] %vm7_vm0, %v11_v5  }
  0x7e   :  { %29 = vst.msk [vmem:[%s62_s1 + $0x3] ss:$4 sm:$0xf] %vm7_vm0, %v23_v6  }
  0x84   :  { %v17_v7 = vpop.permute.xlu0 %16  }
  0x85   :  { %28 = vst.msk [vmem:[%s62_s1 + $0x2] ss:$4 sm:$0xf] %vm7_vm0, %v17_v7  }

// kernel: tile.1
= control target key start
LH: loop header
LB: loop body
LE: loop exit
PB: predicated region body
PF: predicated region fallthrough
CT: control target
= control target key end

     0   :  { %s66_s8 = smov 125   ;;  %s67_s9 = smov 123   ;;  %vm7_vm0 = vcmask 7168   ;;  %s117_s0 = inlined_call_operand.vmem [shape: f32[4,1,1,8], index: 0, kind: input, shape index: {}]   ;;  %s118_s1 = inlined_call_operand.vmem [shape: f32[32,1], index: 1, kind: output, shape index: {}]  }
   0x1   :  { %v4_v0 = vld [vmem:[%s117_s0] sm:$0xf]  ;;  %s65_s0 = smov 127   ;;  %s68_s10 = smov 126  }
   0x2   :  { %5 = vst [vmem:[#allocation0] sm:$0xf] %v4_v0  ;;  %s69_s11 = smov 124   ;;  %s70_s12 = smov 122  }
   0x3   :  { %s71_s13 = smov 121  }
   0x9   :  { %v9_v1 = vld [vmem:[#allocation0] sm:$0xf]  }
   0xa   :  { %v21_v2 = vld [vmem:[#allocation0] sm:$0xf]   ;;  %10 = vrot.lane.b32.xlu0 %v9_v1, %s65_s0 }
   0xb   :  { %22 = vrot.lane.b32.xlu1 %v21_v2, %s66_s8  ;;  %v33_v3 = vld [vmem:[#allocation0] sm:$0xf]  }
   0xc   :  { %34 = vrot.lane.b32.xlu2 %v33_v3, %s67_s9  ;;  %v15_v4 = vld [vmem:[#allocation0] sm:$0xf]  }
   0xd   :  { %v27_v5 = vld [vmem:[#allocation0] sm:$0xf]  }
   0xe   :  { %v39_v6 = vld [vmem:[#allocation0] sm:$0xf]  }
   0xf   :  { %v45_v7 = vld [vmem:[#allocation0] sm:$0xf]  }
  0x10   :  { %v6_v8 = vld [vmem:[#allocation0] sm:$0xf]  }
  0x11   :  { %8 = vst.msk [vmem:[%s118_s1] ss:$8 sm:$0xf] %vm7_vm0, %v6_v8  }
  0x12   :  { %16 = vrot.lane.b32.xlu0 %v15_v4, %s68_s10 }
  0x13   :  { %28 = vrot.lane.b32.xlu1 %v27_v5, %s69_s11 }
  0x14   :  { %40 = vrot.lane.b32.xlu2 %v39_v6, %s70_s12 }
  0x1a   :  { %46 = vrot.lane.b32.xlu0 %v45_v7, %s71_s13 }
  0x66   :  { %v35_v9 = vpop.permute.xlu2 %34  }
  0x67   :  { %55 = vst.msk [vmem:[%s118_s1 + $0x5] ss:$8 sm:$0xf] %vm7_vm0, %v35_v9  }
  0x6e   :  { %v41_v10 = vpop.permute.xlu2 %40  }
  0x6f   :  { %56 = vst.msk [vmem:[%s118_s1 + $0x6] ss:$8 sm:$0xf] %vm7_vm0, %v41_v10  }
  0x7c   :  { %v11_v11 = vpop.permute.xlu0 %10  }
  0x7d   :  { %v23_v12 = vpop.permute.xlu1 %22   ;;  %51 = vst.msk [vmem:[%s118_s1 + $0x1] ss:$8 sm:$0xf] %vm7_vm0, %v11_v11  }
  0x7e   :  { %53 = vst.msk [vmem:[%s118_s1 + $0x3] ss:$8 sm:$0xf] %vm7_vm0, %v23_v12  }
  0x84   :  { %v17_v13 = vpop.permute.xlu0 %16  }
  0x85   :  { %v29_v14 = vpop.permute.xlu1 %28   ;;  %52 = vst.msk [vmem:[%s118_s1 + $0x2] ss:$8 sm:$0xf] %vm7_vm0, %v17_v13  }
  0x86   :  { %54 = vst.msk [vmem:[%s118_s1 + $0x4] ss:$8 sm:$0xf] %vm7_vm0, %v29_v14  }
  0x8c   :  { %v47_v15 = vpop.permute.xlu0 %46  }
  0x8d   :  { %57 = vst.msk [vmem:[%s118_s1 + $0x7] ss:$8 sm:$0xf] %vm7_vm0, %v47_v15  }

// kernel: transposed_upsample_net_forward.3
= control target key start
LH: loop header
LB: loop body
LE: loop exit
PB: predicated region body
PF: predicated region fallthrough
CT: control target
= control target key end

     0   :  { %v103_v3 = vmov 0   ;;  %vm32_vm0 = vcmask 130048   ;;  %s160_s2 = inlined_call_operand.vmem [shape: f32[16,256], index: 2, kind: input, shape index: {}]   ;;  %s161_s0 = inlined_call_operand.vmem [shape: f32[16,16], index: 0, kind: input, shape index: {}]   ;;  %s162_s1 = inlined_call_operand.vmem [shape: f32[16,1], index: 1, kind: input, shape index: {}]   ;;  %s163_s3 = inlined_call_operand.vmem [shape: f32[16,256], index: 3, kind: output, shape index: {}]  }
   0x1   :  { %v18_v0 = vld [vmem:[%s160_s2 + $0x10] sm:$0xff]  ;;  %v19_v1 = vld [vmem:[%s160_s2 + $0x18] sm:$0xff]  ;;  %v16_v2 = vld [vmem:[%s160_s2] sm:$0xff]  ;;  %102 = vset.pattern.permute.xlu0 %v103_v3 }
   0x2   :  { %53 = vmatpush.msra.mxu0 %v18_v0  ;;  %97 = vmatpush.msra.mxu2 %v18_v0  ;;  %v17_v4 = vld [vmem:[%s160_s2 + $0x8] sm:$0xff]  ;;  %v14_v5 = vld [vmem:[%s161_s0] sm:$0xff] }
   0x3   :  { %76 = vmatpush.msra.mxu1 %v19_v1  ;;  %99 = vmatpush.msra.mxu3 %v19_v1  ;;  %v15_v6 = vld [vmem:[%s161_s0 + $0x8] sm:$0xff]  ;;  %v20_v7 = vld [vmem:[%s162_s1] sm:$0xff] }
   0x4   :  { %54 = vmatpush.msra.mxu0 %v16_v2  ;;  %98 = vmatpush.msra.mxu2 %v16_v2  ;;  %v21_v8 = vld [vmem:[%s162_s1 + $0x8] sm:$0xff] }
   0x5   :  { %77 = vmatpush.msra.mxu1 %v17_v4  ;;  %100 = vmatpush.msra.mxu3 %v17_v4 }
   0x6   :  { %93 = vmatmul.msk.f32.vlgmr.msra.gmra.mxu0 %vm32_vm0, %v14_v5  ;;  %94 = vmatmul.msk.f32.vlgmr.msra.gmra.mxu2 %vm32_vm0, %v15_v6 }
   0x7   :  { %95 = vmatmul.msk.f32.vlgmr.msra.gmra.mxu1 %vm32_vm0, %v14_v5  ;;  %96 = vmatmul.msk.f32.vlgmr.msra.gmra.mxu3 %vm32_vm0, %v15_v6 }
   0x8   :  { %24 = vperm.xlu0 %102, %v20_v7  }
  0x10   :  { %29 = vperm.xlu0 %102, %v21_v8  }
  0x7a   :  { %v25_v9 = vpop.permute.xlu0 %24 }
  0x82   :  { %v30_v14 = vpop.permute.xlu0 %29 }
  0x83   :  { %v56_v10 = vpop.f32.mrf.mxu0 }
  0x84   :  { %v57_v11 = vadd.f32 %v56_v10, %v25_v9  ;;  %v79_v12 = vpop.f32.mrf.mxu1 }
  0x85   :  { %v80_v13 = vadd.f32 %v79_v12, %v25_v9 }
  0x86   :  { %85 = vst [vmem:[%s163_s3] sm:$0xff] %v57_v11 }
  0x87   :  { %86 = vst [vmem:[%s163_s3 + $0x8] sm:$0xff] %v80_v13 }
  0x89   :  { %v59_v15 = vpop.f32.mrf.mxu2 }
  0x8a   :  { %v60_v16 = vadd.f32 %v59_v15, %v30_v14  ;;  %v82_v17 = vpop.f32.mrf.mxu3 }
  0x8b   :  { %v83_v18 = vadd.f32 %v82_v17, %v30_v14 }
  0x8c   :  { %87 = vst [vmem:[%s163_s3 + $0x10] sm:$0xff] %v60_v16 }
  0x8d   :  { %88 = vst [vmem:[%s163_s3 + $0x18] sm:$0xff] %v83_v18 }

// kernel: transposed_upsample_net_forward.2
= control target key start
LH: loop header
LB: loop body
LE: loop exit
PB: predicated region body
PF: predicated region fallthrough
CT: control target
= control target key end

     0   :  { %v115_v1 = vmov 0   ;;  %vm43_vm0 = vcmask 64512   ;;  %s175_s2 = inlined_call_operand.vmem [shape: f32[8,128], index: 2, kind: input, shape index: {}]   ;;  %s176_s0 = inlined_call_operand.vmem [shape: f32[32,8], index: 0, kind: input, shape index: {}]   ;;  %s177_s1 = inlined_call_operand.vmem [shape: f32[32,1], index: 1, kind: input, shape index: {}]   ;;  %s178_s3 = inlined_call_operand.vmem [shape: f32[32,128], index: 3, kind: output, shape index: {}]  }
   0x1   :  { %v18_v0 = vld [vmem:[%s175_s2] sm:$0xff]  ;;  %114 = vset.pattern.permute.xlu1 %v115_v1  ;;  %113 = vset.pattern.permute.xlu0 %v115_v1  ;;  %v15_v3 = vld [vmem:[%s176_s0 + $0x8] sm:$0xff]  ;;  %v16_v4 = vld [vmem:[%s176_s0 + $0x10] sm:$0xff] }
   0x2   :  { %v14_v2 = vld [vmem:[%s176_s0] sm:$0xff]  ;;  %71 = vmatpush.msra.mxu0 %v18_v0  ;;  %109 = vmatpush.msra.mxu1 %v18_v0  ;;  %v17_v5 = vld [vmem:[%s176_s0 + $0x18] sm:$0xff]  ;;  %v21_v6 = vld [vmem:[%s177_s1 + $0x10] sm:$0xff] }
   0x3   :  { %110 = vmatpush.msra.mxu2 %v18_v0  ;;  %111 = vmatpush.msra.mxu3 %v18_v0  ;;  %v19_v7 = vld [vmem:[%s177_s1] sm:$0xff]  ;;  %v22_v8 = vld [vmem:[%s177_s1 + $0x18] sm:$0xff]  ;;  %v20_v9 = vld [vmem:[%s177_s1 + $0x8] sm:$0xff] }
   0x4   :  { %105 = vmatmul.msk.f32.vlgmr.msra.gmra.mxu0 %vm43_vm0, %v14_v2  ;;  %106 = vmatmul.msk.f32.vlgmr.msra.gmra.mxu1 %vm43_vm0, %v15_v3 }
   0x5   :  { %107 = vmatmul.msk.f32.vlgmr.msra.gmra.mxu2 %vm43_vm0, %v16_v4  ;;  %108 = vmatmul.msk.f32.vlgmr.msra.gmra.mxu3 %vm43_vm0, %v17_v5 }
   0x6   :  { %35 = vperm.xlu1 %114, %v21_v6   ;;  %25 = vperm.xlu0 %113, %v19_v7  }
   0xe   :  { %40 = vperm.xlu1 %114, %v22_v8   ;;  %30 = vperm.xlu0 %113, %v20_v9  }
  0x78   :  { %v26_v10 = vpop.permute.xlu0 %25  ;;  %v36_v11 = vpop.permute.xlu1 %35 }
  0x80   :  { %v31_v12 = vpop.permute.xlu0 %30  ;;  %v41_v21 = vpop.permute.xlu1 %40 }
  0x81   :  { %v73_v13 = vpop.f32.mrf.mxu0  ;;  %v76_v14 = vpop.f32.mrf.mxu1 }
  0x82   :  { %v74_v15 = vadd.f32 %v73_v13, %v26_v10  ;;  %v77_v16 = vadd.f32 %v76_v14, %v31_v12 }
  0x84   :  { %vm85_vm1 = vcmp.ge.f32.partialorder %v74_v15, 0.0  ;;  %v89_v17 = vmul.f32 0.4, %v74_v15  ;;  %vm86_vm2 = vcmp.ge.f32.partialorder %v77_v16, 0.0  ;;  %v90_v18 = vmul.f32 0.4, %v77_v16 }
  0x86   :  { %v93_v19 = vsel %vm85_vm1, %v74_v15, %v89_v17  ;;  %v94_v20 = vsel %vm86_vm2, %v77_v16, %v90_v18 }
  0x87   :  { %97 = vst [vmem:[%s178_s3] sm:$0xff] %v93_v19 }
  0x88   :  { %98 = vst [vmem:[%s178_s3 + $0x8] sm:$0xff] %v94_v20  ;;  %v79_v22 = vpop.f32.mrf.mxu2  ;;  %v82_v23 = vpop.f32.mrf.mxu3 }
  0x89   :  { %v80_v24 = vadd.f32 %v79_v22, %v36_v11  ;;  %v83_v25 = vadd.f32 %v82_v23, %v41_v21 }
  0x8b   :  { %vm87_vm3 = vcmp.ge.f32.partialorder %v80_v24, 0.0  ;;  %v91_v26 = vmul.f32 0.4, %v80_v24  ;;  %vm88_vm4 = vcmp.ge.f32.partialorder %v83_v25, 0.0  ;;  %v92_v27 = vmul.f32 0.4, %v83_v25 }
  0x8d   :  { %v95_v28 = vsel %vm87_vm3, %v80_v24, %v91_v26  ;;  %v96_v29 = vsel %vm88_vm4, %v83_v25, %v92_v27 }
  0x8e   :  { %99 = vst [vmem:[%s178_s3 + $0x10] sm:$0xff] %v95_v28 }
  0x8f   :  { %100 = vst [vmem:[%s178_s3 + $0x18] sm:$0xff] %v96_v29 }

</bundles_post_ra>
